<compile_context>
chip_gen: v6e
topology: v6e:2x2x1
jax: 0.10.0
libtpu: 0.0.40
codegen_flags: <defaults>
</compile_context>

<pallas_src>
import math
import functools

import jax
import jax.numpy as jnp
from jax.experimental import pallas as pl
from jax.experimental.pallas import tpu as pltpu


# ----------------------------------------------------------------------------
# Buffer / parameter setup (mirrors PositionalEncoding.__init__)
# ----------------------------------------------------------------------------
def make_sinusoidal_pe(d_model: int, max_seq_length: int) -> jnp.ndarray:
    """[1, max_seq_length, d_model] sinusoidal table (float32)."""
    position = jnp.arange(max_seq_length, dtype=jnp.float32)[:, None]          # [S, 1]
    div_term = jnp.exp(
        jnp.arange(0, d_model, 2, dtype=jnp.float32) * (-math.log(10000.0) / d_model)
    )                                                                            # [D/2]
    angles = position * div_term                                                 # [S, D/2]
    pe = jnp.zeros((max_seq_length, d_model), dtype=jnp.float32)
    pe = pe.at[:, 0::2].set(jnp.sin(angles))
    pe = pe.at[:, 1::2].set(jnp.cos(angles))
    return pe[None, :, :]                                                        # [1, S, D]


def make_learnable_pe(key, d_model: int, max_seq_length: int) -> jnp.ndarray:
    """kaiming_normal_ on a (1, max_seq, d_model) tensor (fan_in = max_seq*d_model)."""
    fan_in = max_seq_length * d_model
    std = math.sqrt(2.0 / fan_in)
    return std * jax.random.normal(key, (1, max_seq_length, d_model), dtype=jnp.float32)


# ----------------------------------------------------------------------------
# Pallas kernels
# ----------------------------------------------------------------------------
def _pe_add_kernel(x_ref, pe_ref, o_ref):
    # eval-mode forward: x + pe  (dropout is identity in eval)
    o_ref[...] = (x_ref[...] + pe_ref[...]).astype(o_ref.dtype)


def _pe_add_dropout_kernel(x_ref, pe_ref, u_ref, o_ref, *, rate: float, scale: float):
    # training-mode forward: inverted dropout fused as a single select
    y = x_ref[...].astype(jnp.float32) + pe_ref[...].astype(jnp.float32)
    keep = u_ref[...] >= jnp.float32(rate)
    o_ref[...] = jnp.where(keep, y * jnp.float32(scale), jnp.float32(0.0)).astype(o_ref.dtype)


# ----------------------------------------------------------------------------
# Tiling helper
# ----------------------------------------------------------------------------
def _pick_tile(total: int, elem_bytes: int, target_bytes: int = 2 * 1024 * 1024) -> int:
    """Largest multiple-of-128 divisor of `total` with tile*elem_bytes <= target.
    Falls back to the full axis when `total` is not a multiple of 128 (block
    then equals the full array dim, which is always legal)."""
    max_elems = max(128, target_bytes // elem_bytes)
    if total <= max_elems or total % 128 != 0:
        return total
    best = 128
    t = 128
    while t <= max_elems:
        if total % t == 0:
            best = t
        t += 128
    return best


# ----------------------------------------------------------------------------
# Wrapper (the nn.Module.forward equivalent)
# ----------------------------------------------------------------------------
def positional_encoding_forward(x, pe, *, dropout_rate=0.1, training=False,
                                rng_key=None, donate_x=False):
    """
    x:  [B, S, D]
    pe: [1, max_seq, D] buffer/parameter
    Returns dropout(x + pe[:, :S, :]) with the same shape/dtype as x.
    """
    B, S, D = x.shape
    pe_slice = pe[:, :S, :]

    # Lane-dense, VMEM-bounded layout: flatten (S, D) and tile the flat axis.
    flat = S * D
    tile = _pick_tile(flat, jnp.dtype(x.dtype).itemsize)
    n_tiles = flat // tile

    x3 = x.reshape(B, 1, flat)
    pe3 = pe_slice.reshape(1, 1, flat)

    # Tile axis outermost, batch innermost -> pe block index constant over the
    # inner axis, so its DMA is skipped for consecutive batch iterations.
    grid = (n_tiles, B)
    blk = (1, 1, tile)
    x_spec = pl.BlockSpec(blk, lambda t, b: (b, 0, t))
    pe_spec = pl.BlockSpec(blk, lambda t, b: (0, 0, t))
    out_spec = pl.BlockSpec(blk, lambda t, b: (b, 0, t))
    out_shape = jax.ShapeDtypeStruct((B, 1, flat), x.dtype)

    cparams = pltpu.CompilerParams(
        dimension_semantics=("parallel", "parallel"),   # v7x megacore; neutral on v5e/v6e
        vmem_limit_bytes=32 * 1024 * 1024,              # explicit, safe on all chips
    )
    io_alias = {0: 0} if donate_x else {}

    if (not training) or dropout_rate <= 0.0:
        out = pl.pallas_call(
            _pe_add_kernel,
            out_shape=out_shape,
            grid=grid,
            in_specs=[x_spec, pe_spec],
            out_specs=out_spec,
            compiler_params=cparams,
            input_output_aliases=io_alias,
        )(x3, pe3)
        return out.reshape(B, S, D)

    if dropout_rate >= 1.0:
        # p = 1.0 drops everything (PyTorch semantics); avoid int overflow/div-by-zero.
        return jnp.zeros_like(x)

    if rng_key is None:
        rng_key = jax.random.PRNGKey(0)
    # Mask generation in plain JAX (portable across TPU + interpret mode);
    # the select + scale is fused inside the kernel.
    u = jax.random.uniform(rng_key, (B, 1, flat), dtype=jnp.float32)

    kernel = functools.partial(
        _pe_add_dropout_kernel,
        rate=float(dropout_rate),
        scale=1.0 / (1.0 - float(dropout_rate)),
    )
    out = pl.pallas_call(
        kernel,
        out_shape=out_shape,
        grid=grid,
        in_specs=[x_spec, pe_spec, x_spec],   # u shares x's tiling
        out_specs=out_spec,
        compiler_params=cparams,
        input_output_aliases=io_alias,
    )(x3, pe3, u)
    return out.reshape(B, S, D)


# ----------------------------------------------------------------------------
# Demo / self-test
# ----------------------------------------------------------------------------
if __name__ == "__main__":
    B, S, D = 2, 8, 32
    MAX_SEQ = 64
    key = jax.random.PRNGKey(0)
    kx, kpe, kdrop = jax.random.split(key, 3)

    x = jax.random.normal(kx, (B, S, D), dtype=jnp.float32)
    pe = make_sinusoidal_pe(D, MAX_SEQ)                       # learnable=False path

    # eval-mode forward (dropout is identity) — deterministic, check vs. reference
    out = positional_encoding_forward(x, pe, dropout_rate=0.1, training=False)
    out = jax.block_until_ready(out)
    ref = x + pe[:, :S, :]
    assert out.shape == (B, S, D)
    assert jnp.allclose(out, ref, atol=1e-6, rtol=1e-6), "eval mismatch vs reference"

    # training-mode forward: each element must be either 0 or (x+pe)/(1-p)
    p = 0.1
    out_tr = positional_encoding_forward(x, pe, dropout_rate=p, training=True, rng_key=kdrop)
    out_tr = jax.block_until_ready(out_tr)
    assert out_tr.shape == (B, S, D)
    scaled = ref / (1.0 - p)
    ok = jnp.isclose(out_tr, scaled, atol=1e-5) | jnp.isclose(out_tr, 0.0, atol=1e-7)
    assert bool(jnp.all(ok)), "dropout output not in {0, (x+pe)/(1-p)}"

    # learnable=True variant (kaiming-normal init)
    pe_learn = make_learnable_pe(kpe, D, MAX_SEQ)
    out_l = positional_encoding_forward(x, pe_learn, training=False)
    out_l = jax.block_until_ready(out_l)
    assert jnp.allclose(out_l, x + pe_learn[:, :S, :], atol=1e-6, rtol=1e-6)

    print("KERNEL_OK")
</pallas_src>

<mosaic_0001>
module attributes {stable_mosaic.version = 11 : i64} {
  func.func @_pe_add_kernel(%arg0: i32, %arg1: i32, %arg2: memref<1x1x256xf32, #tpu.memory_space<vmem>>, %arg3: memref<1x1x256xf32, #tpu.memory_space<vmem>>, %arg4: memref<1x1x256xf32, #tpu.memory_space<vmem>>) attributes {dimension_semantics = [#tpu.dimension_semantics<parallel>, #tpu.dimension_semantics<parallel>], iteration_bounds = array<i64: 1, 2>, scalar_prefetch = 0 : i64, scratch_operands = 0 : i64, tpu.core_type = #tpu.core_type<tc>, window_params = [{transform_indices = @transform_0, window_bounds = array<i64: 1, 1, 256>}, {transform_indices = @transform_1, window_bounds = array<i64: 1, 1, 256>}, {transform_indices = @transform_2, window_bounds = array<i64: 1, 1, 256>}]} {
    %c0 = arith.constant 0 : index
    %c0_0 = arith.constant 0 : index
    %c0_1 = arith.constant 0 : index
    %0 = vector.load %arg2[%c0, %c0_0, %c0_1] : memref<1x1x256xf32, #tpu.memory_space<vmem>>, vector<1x1x256xf32>
    %c0_2 = arith.constant 0 : index
    %c0_3 = arith.constant 0 : index
    %c0_4 = arith.constant 0 : index
    %1 = vector.load %arg3[%c0_2, %c0_3, %c0_4] : memref<1x1x256xf32, #tpu.memory_space<vmem>>, vector<1x1x256xf32>
    %2 = arith.addf %0, %1 : vector<1x1x256xf32>
    %c0_5 = arith.constant 0 : index
    %c0_6 = arith.constant 0 : index
    %c0_7 = arith.constant 0 : index
    %3 = vector.load %arg4[%c0_5, %c0_6, %c0_7] : memref<1x1x256xf32, #tpu.memory_space<vmem>>, vector<1x1x256xf32>
    tpu.vector_store %arg4[%c0_5, %c0_6, %c0_7], %2 {strides = array<i32>} : memref<1x1x256xf32, #tpu.memory_space<vmem>>, vector<1x1x256xf32>,
    return
  }
  func.func @transform_0(%arg0: i32, %arg1: i32) -> (i32, i32, i32) {
    %c0_i32 = arith.constant 0 : i32
    %c0_i32_0 = arith.constant 0 : i32
    return %arg1, %c0_i32, %arg0 : i32, i32, i32
  }
  func.func @transform_1(%arg0: i32, %arg1: i32) -> (i32, i32, i32) {
    %c0_i32 = arith.constant 0 : i32
    %c0_i32_0 = arith.constant 0 : i32
    %c0_i32_1 = arith.constant 0 : i32
    return %c0_i32, %c0_i32_0, %arg0 : i32, i32, i32
  }
  func.func @transform_2(%arg0: i32, %arg1: i32) -> (i32, i32, i32) {
    %c0_i32 = arith.constant 0 : i32
    %c0_i32_0 = arith.constant 0 : i32
    return %arg1, %c0_i32, %arg0 : i32, i32, i32
  }
}

</mosaic_0001>

<bundles_post_ra>
// kernel: tpu_custom_call.1
= control target key start
LH: loop header
LB: loop body
LE: loop exit
PB: predicated region body
PF: predicated region fallthrough
CT: control target
= control target key end

     0   :  { %7 = vsyncpa [#allocation3], 0  ;;  %s734_s0 = inlined_call_operand.hbm [shape: f32[2,1,256], index: 0, kind: input, shape index: {}]   ;;  %s735_s1 = inlined_call_operand.hbm [shape: f32[1,1,256], index: 1, kind: input, shape index: {}]   ;;  %s736_s2 = inlined_call_operand.hbm [shape: f32[2,1,256], index: 2, kind: output, shape index: {}]  }
   0x1   :  { %9 = vsyncpa [#allocation3 + $0x1], 0 }
   0x2   :  { %10 = vsyncpa [#allocation6], 0 }
   0x3   :  { %11 = vsyncpa [#allocation4], 0 }
   0x4   :  { %13 = vsyncpa [#allocation4 + $0x1], 0  ;;  %s573_s9 = smov 0   ;;  %s575_s10 = smov 0  }
   0x5   :  { %s577_s11 = smov 0   ;;  %s579_s12 = smov 0  }
   0x6   :  { %s581_s13 = smov 0   ;;  %s583_s14 = smov 0  }
   0x7 LB: > { %s323_s15 = sadd.s32 4294967295, %s553_s14   ;;  %s324_s16 = sadd.s32 4294967294, %s553_s14   ;;  %s553_s14 = sphi %s583_s14, %s19_s14   ;;  %s549_s13 = sphi %s581_s13, %s753_s13   ;;  %s545_s12 = sphi %s579_s12, %s752_s12   ;;  %s541_s11 = sphi %s577_s11, %s751_s11   ;;  %s537_s10 = sphi %s575_s10, %s750_s10   ;;  %s533_s9 = sphi %s573_s9, %s749_s9  }
   0x8   : > { %p53_p0 = scmp.ne.s32.totalorder %s537_s10, %s533_s9  ;;  %p607_p1 = scmp.eq.s32.totalorder %s323_s15, 0 }
   0x9   : > { %p611_p2 = scmp.eq.s32.totalorder %s323_s15, 1  ;;  %p111_p3 = scmp.eq.s32.totalorder %s324_s16, 1 }
   0xa   : > { %p617_p4 = por %p607_p1, %p53_p0  ;;  %p325_p5 = scmp.ge.s32.totalorder %s553_s14, 1 }
   0xb   : > { %p622_p6 = por %p111_p3, %p53_p0  ;;  %p118_p7 = scmp.lt.s32.totalorder %s553_s14, 3 }
   0xc   : > { %s740_s19 = scalar_select %p617_p4, 1, 0 }
   0xd   : > { %s741_s20 = scalar_select %p622_p6, 1, 0 }
   0xe   : > { %p627_p8 = pnand %p325_p5, %p118_p7  ;;  %s555_s22 = smov [#allocation5]  }
   0xf   : > { %s134_s23 = sshll.u32 %s555_s22, 4  ;;  %s28_s25 = sadd.s32 1, %s549_s13  ;;  %s135_s23 = int_to_ptr.vmem [resolvable:$true] %s134_s23 }
  0x10   : > { %p350_p10 = pneg %p627_p8  ;;  %s40_s26 = sadd.s32 1, %s541_s11 }
  0x11   : > { %p29_p12 = scmp.ge.s32.totalorder %s28_s25, 2  ;;  %s426_s27 = scalar_lea.vmem %s135_s23, 32 }
  0x12   : > { %p636_p11 = pnand %p350_p10, %p607_p1  ;;  %p427_p0 = scmp.ne.s32.totalorder %s135_s23, %s426_s27 }
  0x13   : > { %p434_p7 = scmp.lt.s32.totalorder %s135_s23, %s135_s23  ;;  %p435_p6 = scmp.lt.s32.totalorder %s426_s27, %s426_s27 }
  0x14   : > { %p417_p13 = pneg %p636_p11 }
  0x15   : > { %p436_p9 = por %p435_p6, %p434_p7 }
  0x16   : > { %p429_p3 = pnand %p427_p0, %p417_p13 }
  0x18   : > { %p430_p5 = pneg %p429_p3 }
  0x1a   : > { %p437_p4 = pnand %p436_p9, %p430_p5 }
  0x1c   : > { %440 = shalt.err (!%p437_p4)
}
  0x1d   : > { %353 = dma.hbm_to_vmem [thread:$0]  (!%p636_p11), %s735_s1, 32, %s135_s23, [#allocation6]  }
  0x1e   : > { %s755_s25 = smov (%p29_p12, %s28_s25), 0  ;;  %p47_p6 = scmp.ne.s32.totalorder %s541_s11, %s537_s10 }
  0x1f   : > { %p48_p4 = scmp.eq.s32.totalorder %s553_s14, 0  ;;  %s35_s30 = ssub.s32 %s549_s13, %s755_s25 }
  0x20   : > { %p363_p9 = scmp.lt.s32.totalorder %s553_s14, 2  ;;  %p38_p10 = scmp.eq.s32.totalorder %s35_s30, 0 }
  0x21   : > { %p49_p13 = por %p48_p4, %p47_p6  ;;  %p659_p0 = por %p611_p2, %p47_p6 }
  0x22   : > { %s145_s4 = sand.u32 1, %s541_s11   ;;  %s340_s7 = sshll.u32 %s549_s13, 5 }
  0x23   : > { %s665_s5 = scalar_select %p38_p10, %s541_s11, %s40_s26  }
  0x24   : > { %s328_s6 = sshll.u32 %s145_s4, 1  ;;  %s157_s16 = scalar_lea.hbm %s734_s0, %s340_s7 }
  0x25   : > { %s149_s22 = scalar_lea.vmem [#allocation2], %s328_s6  ;;  %p671_p11 = pnand %p363_p9, %p49_p13 }
  0x26   : > { %s159_s23 = sshll.u32 %s149_s22, 4  ;;  %s146_s18 = scalar_lea.sflag [#allocation3], %s145_s4  ;;  %s160_s23 = int_to_ptr.vmem [resolvable:$true] %s159_s23 }
  0x27   : > { %p443_p2 = pneg %p671_p11  ;;  %s454_s27 = scalar_lea.vmem %s160_s23, 32 }
  0x28   : > { %p455_p12 = scmp.ne.s32.totalorder %s160_s23, %s454_s27  ;;  %s556_s26 = smov [#allocation2]  }
  0x29   : > { %s459_s28 = sshll.u32 %s556_s26, 4  ;;  %s460_s28 = int_to_ptr.vmem [resolvable:$false] %s459_s28 }
  0x2a   : > { %p457_p3 = pnand %p455_p12, %p443_p2  ;;  %s461_s29 = scalar_lea.vmem %s460_s28, 64 }
  0x2b   : > { %p462_p7 = scmp.lt.s32.totalorder %s160_s23, %s460_s28  ;;  %p463_p6 = scmp.lt.s32.totalorder %s461_s29, %s454_s27 }
  0x2c   : > { %p458_p5 = pneg %p457_p3 }
  0x2d   : > { %p464_p4 = por %p463_p6, %p462_p7 }
  0x2f   : > { %p465_p10 = pnand %p464_p4, %p458_p5 }
  0x31   : > { %468 = shalt.err (!%p465_p10)
}
  0x32   : > { %357 = dma.hbm_to_vmem [thread:$0]  (!%p671_p11), %s157_s16, 32, %s160_s23, %s146_s18  }
  0x33   : > { %168 = sbr.rel (%p627_p8) target bundleno = 83 (0x53), region = 28  ;;  %s682_s30 = sand.u32 (!%p627_p8), 1, %s537_s10  }
  0x34   : > { %s332_s4 = sshll.u32 (!%p627_p8), %s682_s30, 1  ;;  %s171_s6 = scalar_lea.sflag (!%p627_p8), [#allocation3], %s682_s30 }
  0x35   : > { %s174_s7 = scalar_lea.vmem (!%p627_p8), [#allocation2], %s332_s4  ;;  %p746_p9 = scmp.ne.s32.totalorder (!%p627_p8), %s740_s19, 0 }
  0x38   : > { %520 = dma.done.wait (%p746_p9), %s171_s6, 32  }
  0x39   : > { %522 = vsyncadd (%p746_p9), %s171_s6, 4294967264 }
  0x3a   : > { %524 = dma.done.wait (%p607_p1), [#allocation6], 32  }
  0x3b   : > { %526 = vsyncadd (%p607_p1), [#allocation6], 4294967264  ;;  %v205_v0 = vlaneseq  ;;  %s198_s21 = scalar_lea.vmem [#allocation7], %s332_s4  ;;  %s341_s15 = sshll.u32 %s545_s12, 5  ;;  %v202_v1 = vld [vmem:[%s174_s7] sm:$0x3] }
  0x3c   : > { %s227_s8 = sshll.u32 %s198_s21, 4  ;;  %v203_v2 = vld [vmem:[#allocation5] sm:$0x3]  ;;  %s225_s22 = scalar_lea.hbm %s736_s2, %s341_s15  ;;  %s228_s8 = int_to_ptr.vmem [resolvable:$true] %s227_s8 }
  0x3d   : > { %vm207_vm0 = vcmp.lt.s32.totalorder %v205_v0, 256  ;;  %v204_v3 = vadd.f32 %v203_v2, %v202_v1  ;;  %s211_s23 = scalar_lea.sflag [#allocation4], %s682_s30  ;;  %s469_s17 = scalar_lea.vmem %s228_s8, 32 }
  0x3e   : > { %p470_p1 = scmp.ne.s32.totalorder %s228_s8, %s469_s17  ;;  %s557_s24 = smov [#allocation7]  }
  0x3f   : > { %209 = vst.msk [vmem:[%s198_s21] sm:$0x3] %vm207_vm0, %v204_v3  ;;  %s473_s18 = sshll.u32 %s557_s24, 4  ;;  %s474_s18 = int_to_ptr.vmem [resolvable:$false] %s473_s18 }
  0x40   : > { %p471_p8 = pnand %p470_p1, %p659_p0  ;;  %s475_s12 = scalar_lea.vmem %s474_s18, 64 }
  0x41   : > { %p476_p11 = scmp.lt.s32.totalorder %s228_s8, %s474_s18  ;;  %p477_p2 = scmp.lt.s32.totalorder %s475_s12, %s469_s17 }
  0x42   : > { %p472_p13 = pneg %p471_p8 }
  0x43   : > { %p478_p12 = por %p477_p2, %p476_p11 }
  0x45   : > { %p479_p3 = pnand %p478_p12, %p472_p13 }
  0x47   : > { %482 = shalt.err (!%p479_p3)
}
  0x48   : > { %s483_s27 = scalar_lea.hbm %s225_s22, 32  ;;  %s487_s29 = scalar_lea.hbm %s736_s2, 64 }
  0x49   : > { %p484_p5 = scmp.ne.s32.totalorder %s225_s22, %s483_s27  ;;  %p488_p4 = scmp.lt.s32.totalorder %s225_s22, %s736_s2 }
  0x4a   : > { %p489_p10 = scmp.lt.s32.totalorder %s487_s29, %s483_s27 }
  0x4b   : > { %p485_p7 = pnand %p484_p5, %p659_p0 }
  0x4c   : > { %p490_p9 = por %p489_p10, %p488_p4 }
  0x4d   : > { %p486_p6 = pneg %p485_p7 }
  0x4f   : > { %p491_p1 = pnand %p490_p9, %p486_p6 }
  0x51   : > { %494 = shalt.err (!%p491_p1)
}
  0x52   : > { %348 = dma.vmem_to_hbm [thread:$0]  (%p659_p0), %s228_s8, 32, %s225_s22, %s211_s23  }
  0x53 PF: > { %s239_s6 = sand.u32 1, %s533_s9   ;;  %p747_p8 = scmp.ne.s32.totalorder %s741_s20, 0 }
  0x54   : > { %p748_p13 = scmp.ge.s32.totalorder %s553_s14, 2  ;;  %s240_s7 = scalar_lea.sflag [#allocation4], %s239_s6 }
  0x56   : > { %p359_p11 = pnand %p748_p13, %p747_p8 }
  0x58   : > { %p360_p2 = pneg %p359_p11 }
  0x5a   : > { %528 = dma.done.wait (%p360_p2), %s240_s7, 32  }
  0x5b   : > { %530 = vsyncadd (%p360_p2), %s240_s7, 4294967264  ;;  %s19_s14 = sadd.s32 1, %s553_s14   ;;  %s749_s9 = smov %s537_s10 }
  0x5c   : > { %p16_p12 = scmp.ge.s32.totalorder %s19_s14, 4   ;;  %s750_s10 = smov %s541_s11 }
  0x5d   : > { %s751_s11 = smov %s665_s5  ;;  %s752_s12 = smov %s549_s13 }
  0x5e   : > { %s753_s13 = smov %s755_s25  ;;  %18 = sbr.rel (!%p16_p12) target bundleno = 7 (0x7), region = 78 }
  0x63   :  { %245 = vsyncpa [#allocation3], 1 }
  0x64   :  { %247 = vsyncpa [#allocation3 + $0x1], 1 }
  0x65   :  { %248 = vsyncpa [#allocation6], 1 }
  0x66   :  { %249 = vsyncpa [#allocation4], 1 }
  0x67   :  { %251 = vsyncpa [#allocation4 + $0x1], 1 }

</bundles_post_ra>
